<compile_context>
chip_gen: v7x
topology: tpu7x:2x2x1
jax: 0.10.0
libtpu: 0.0.40
codegen_flags: <defaults>
</compile_context>

<pallas_src>
import functools
import math

import numpy as np
import jax
import jax.numpy as jnp
from jax import lax
from jax.experimental import pallas as pl
from jax.experimental.pallas import tpu as pltpu

_BN_EPS = 1e-5


# ---------------------------------------------------------------------------
# Tiling helpers
# ---------------------------------------------------------------------------
def _round_up(v, m):
    return -(-v // m) * m


def _vmem_limit_bytes():
    """Per-generation scoped-VMEM cap (v7x: 64 MiB physical, v5e/v6e: 128 MiB)."""
    cap = 64 * 1024 * 1024
    try:
        cap = int(getattr(pltpu.get_tpu_info(), "vmem_capacity_bytes", cap))
    except Exception:
        pass
    return max(32 * 1024 * 1024, min(cap * 3 // 4, 96 * 1024 * 1024))


def _pick_row_tile(H, W, Cin, c_tot, init_c, new_c, in_item, vmem_budget,
                   max_lanes=None):
    """Largest row tile TH (divisor of H) with lane-dense output (TH*W % 128 == 0)
    whose double-buffered working set fits the VMEM budget."""
    def step_bytes(th):
        tq = th * W
        ppad = _round_up((th + 2) * W, 128)
        return (2 * Cin * ppad * in_item                      # dbl-buffered input window
                + 2 * c_tot * tq * in_item                    # dbl-buffered output block
                + 4 * (Cin + init_c + 4 * new_c) * ppad       # live f32 temporaries
                + (1 << 20))
    divs = [d for d in range(H, 0, -1) if H % d == 0]
    aligned = [d for d in divs if (d * W) % 128 == 0]
    cands = aligned if aligned else [H]
    if max_lanes is not None:
        lim = [d for d in cands if d * W <= max_lanes]
        cands = lim if lim else [min(cands)]
    for d in cands:
        if step_bytes(d) <= vmem_budget:
            return d
    return min(cands)


# ---------------------------------------------------------------------------
# Shared fused compute: 1x1 conv + BN + ReLU -> depthwise 3x3 + BN + ReLU ->
# two lane-dense sub-slab stores, on lane-flattened (channel, rows*W) planes.
# ---------------------------------------------------------------------------
def _ghost_compute(x_raw, w1_ref, b1_ref, w2_ref, b2_ref, cst_ref, o_ref,
                   is_first, is_last, *, W, Cin, init_c, new_c, ratio, Ppad, TQ):
    x_all = x_raw.astype(jnp.float32)            # (Cin, Ppad) extended row window
    m_left = cst_ref[0:1, :]                     # 1.0 where col != 0
    m_right = cst_ref[1:2, :]                    # 1.0 where col != W-1
    top_zone = cst_ref[2:3, :]                   # extended row 0
    bot_zone = cst_ref[3:4, :]                   # extended row TH+1 (and lane tail)

    # Zero y1 on the halo rows at the global image top/bottom so the depthwise
    # conv sees PyTorch's zero padding of y1 (relu(b1) must not leak in).
    hmask = 1.0 - is_first * top_zone - is_last * bot_zone    # (1, Ppad)

    # ---- primary_conv: 1x1 conv + folded BN + ReLU over the extended rows ----
    if Cin >= 8:
        y1 = jnp.dot(w1_ref[...], x_all, preferred_element_type=jnp.float32)
    else:
        y1 = w1_ref[:, 0:1] * x_all[0:1, :]
        for ci in range(1, Cin):
            y1 = y1 + w1_ref[:, ci:ci + 1] * x_all[ci:ci + 1, :]
    y1 = jnp.maximum(y1 + b1_ref[...], 0.0) * hmask           # (init_c, Ppad)

    # Grouped-conv source channels: output channel c reads y1[c // (ratio-1)].
    if ratio == 2:
        y1_src = y1
    else:
        y1_src = jnp.broadcast_to(
            y1[:, None, :], (init_c, ratio - 1, Ppad)).reshape(new_c, Ppad)

    # ---- cheap_operation: depthwise 3x3 (+ BN2 scale folded into w2) + ReLU ----
    # Only 4 XLU rolls: two row rolls, then the per-column partial sums shifted
    # by +/-1 lane (with host-precomputed left/right edge masks).
    rows = (y1_src,
            pltpu.roll(y1_src, shift=(-W) % Ppad, axis=1),
            pltpu.roll(y1_src, shift=(-2 * W) % Ppad, axis=1))
    t = []
    for dw in range(3):
        p = rows[0] * w2_ref[:, dw:dw + 1]
        p = p + rows[1] * w2_ref[:, 3 + dw:4 + dw]
        p = p + rows[2] * w2_ref[:, 6 + dw:7 + dw]
        t.append(p)
    acc = t[1]
    acc = acc + m_left * pltpu.roll(t[0], shift=1, axis=1)
    acc = acc + m_right * pltpu.roll(t[2], shift=Ppad - 1, axis=1)
    y2 = jnp.maximum(acc + b2_ref[...], 0.0)                   # (new_c, Ppad)

    # ---- concat: two direct lane-dense sub-slab stores (no concat temporary) ----
    if ratio == 2:
        y1_out = rows[1][:, :TQ]          # reuse the -W roll: interior rows of y1
    else:
        y1_out = pltpu.roll(y1, shift=(-W) % Ppad, axis=1)[:, :TQ]
    o_ref[:, :init_c, :] = y1_out[None].astype(o_ref.dtype)
    o_ref[:, init_c:, :] = y2[:, :TQ][None].astype(o_ref.dtype)


def _ghost_kernel_whole(x_ref, w1_ref, b1_ref, w2_ref, b2_ref, cst_ref, o_ref,
                        **kw):
    # Whole image per step: the BlockSpec already DMA'd the padded image.
    _ghost_compute(x_ref[0], w1_ref, b1_ref, w2_ref, b2_ref, cst_ref, o_ref,
                   1.0, 1.0, **kw)


def _ghost_kernel_tiled(x_hbm, w1_ref, b1_ref, w2_ref, b2_ref, cst_ref, o_ref,
                        xbuf, sem, *, W, Cin, init_c, new_c, ratio, Ppad, TQ):
    # Row tiles with a 1-row halo: overlapping windows are DMA'd from the padded
    # flat HBM array into a double-buffered VMEM scratch (no host duplication).
    n = pl.program_id(0)
    i = pl.program_id(1)
    nsteps = pl.num_programs(1)
    slot = i % 2

    def fetch(row_tile, s):
        pltpu.make_async_copy(
            x_hbm.at[n, :, pl.ds(row_tile * TQ, Ppad)],
            xbuf.at[s], sem.at[s]).start()

    # Prime the pipeline at the first row tile of this image; prefetch the next
    # row tile while computing the current one (scratch persists across steps).
    @pl.when(i == 0)
    def _():
        fetch(i, slot)

    @pl.when(i + 1 < nsteps)
    def _():
        fetch(jnp.minimum(i + 1, nsteps - 1), 1 - slot)

    pltpu.make_async_copy(
        x_hbm.at[n, :, pl.ds(i * TQ, Ppad)], xbuf.at[slot], sem.at[slot]).wait()

    _ghost_compute(xbuf[slot], w1_ref, b1_ref, w2_ref, b2_ref, cst_ref, o_ref,
                   (i == 0).astype(jnp.float32),
                   (i == nsteps - 1).astype(jnp.float32),
                   W=W, Cin=Cin, init_c=init_c, new_c=new_c, ratio=ratio,
                   Ppad=Ppad, TQ=TQ)


# ---------------------------------------------------------------------------
# Wrapper (NCHW in, NCHW out; only a single cheap pad + BN folding on host)
# ---------------------------------------------------------------------------
def ghost_conv2d(x, params, out_channels, ratio=2, *, max_lanes=None):
    """Fused Pallas GhostConv2d forward (kernel_size=1, dw_kernel_size=3, stride=1)."""
    # TODO(synk): general kernel_size / stride for primary_conv (defaults 1 / 1 only).
    # TODO(synk): fold batch into the lane axis for tiny spatial dims (H*W < 128).
    N, Cin, H, W = x.shape
    init_c = math.ceil(out_channels / ratio)
    new_c = init_c * (ratio - 1)
    c_tot = init_c + new_c
    io_dtype = x.dtype
    in_item = jnp.dtype(io_dtype).itemsize

    vmem_limit = _vmem_limit_bytes()
    budget = int(vmem_limit * 0.6)
    TH = _pick_row_tile(H, W, Cin, c_tot, init_c, new_c, in_item, budget, max_lanes)
    if N == 1 and TH == H:
        # v7x has 2 TensorCores: avoid a single-step grid when the batch is 1.
        th2 = _pick_row_tile(H, W, Cin, c_tot, init_c, new_c, in_item, budget,
                             max_lanes=(TH * W) // 2)
        if th2 < H and (th2 * W) % 128 == 0:
            TH = th2
    HT = H // TH
    TQ = TH * W                          # output lanes per tile
    Pw = (TH + 2) * W                    # meaningful extended-window lanes
    Ppad = _round_up(Pw, 128)            # lane-aligned window width

    # Single cheap pad of the flattened input: a zero row on top and bottom plus
    # a small lane tail so every Ppad-lane window read is in bounds. Lanes >= Pw
    # of a window never propagate to any stored output lane.
    x_flat = x.reshape(N, Cin, H * W)
    xp = jnp.pad(x_flat, ((0, 0), (0, 0), (W, W + Ppad - Pw)))
    assert (HT - 1) * TQ + Ppad == xp.shape[-1]   # last window exactly in bounds

    # Fold BatchNorm (eval mode) into the conv weights / biases.
    s1 = params["bn1_gamma"] / jnp.sqrt(params["bn1_var"] + _BN_EPS)
    w1f = (params["w1"].reshape(init_c, Cin) * s1[:, None]).astype(jnp.float32)
    b1f = (params["bn1_beta"] - params["bn1_mean"] * s1).reshape(init_c, 1)
    b1f = b1f.astype(jnp.float32)
    s2 = params["bn2_gamma"] / jnp.sqrt(params["bn2_var"] + _BN_EPS)
    w2f = (params["w2"].reshape(new_c, 9) * s2[:, None]).astype(jnp.float32)
    b2f = (params["bn2_beta"] - params["bn2_mean"] * s2).reshape(new_c, 1)
    b2f = b2f.astype(jnp.float32)

    # Host-precomputed lane masks (no in-kernel iota / remainder).
    q = np.arange(Ppad)
    wq = q % W
    cst = jnp.asarray(np.stack([
        wq != 0,                 # left-tap validity
        wq != W - 1,             # right-tap validity
        q < W,                   # extended row 0 (top halo)
        q >= (TH + 1) * W,       # extended row TH+1 (bottom halo) + lane tail
    ]).astype(np.float32))

    common = dict(W=W, Cin=Cin, init_c=init_c, new_c=new_c, ratio=ratio,
                  Ppad=Ppad, TQ=TQ)
    flops = 2 * N * H * W * (Cin * init_c + 9 * new_c) + 6 * N * H * W * c_tot
    cost = pl.CostEstimate(
        flops=flops, transcendentals=0,
        bytes_accessed=in_item * (int(xp.size) + N * c_tot * H * W)
        + 4 * (init_c * (Cin + 1) + new_c * 10 + 4 * Ppad))
    out_shape = jax.ShapeDtypeStruct((N, c_tot, H * W), io_dtype)

    if HT == 1:
        # Whole-image tiles: plain BlockSpec pipelining, grid over batch only.
        z = lambda n: (0, 0)
        y_flat = pl.pallas_call(
            functools.partial(_ghost_kernel_whole, **common),
            out_shape=out_shape,
            grid=(N,),
            in_specs=[
                pl.BlockSpec((1, Cin, Ppad), lambda n: (n, 0, 0)),
                pl.BlockSpec((init_c, Cin), z),
                pl.BlockSpec((init_c, 1), z),
                pl.BlockSpec((new_c, 9), z),
                pl.BlockSpec((new_c, 1), z),
                pl.BlockSpec((4, Ppad), z),
            ],
            out_specs=pl.BlockSpec((1, c_tot, H * W), lambda n: (n, 0, 0)),
            compiler_params=pltpu.CompilerParams(
                dimension_semantics=("parallel",),
                vmem_limit_bytes=vmem_limit),
            cost_estimate=cost,
        )(xp, w1f, b1f, w2f, b2f, cst)
    else:
        # Row tiles with in-kernel halo DMA (input is never duplicated in HBM).
        z = lambda n, i: (0, 0)
        y_flat = pl.pallas_call(
            functools.partial(_ghost_kernel_tiled, **common),
            out_shape=out_shape,
            grid=(N, HT),
            in_specs=[
                pl.BlockSpec(memory_space=pl.ANY),
                pl.BlockSpec((init_c, Cin), z),
                pl.BlockSpec((init_c, 1), z),
                pl.BlockSpec((new_c, 9), z),
                pl.BlockSpec((new_c, 1), z),
                pl.BlockSpec((4, Ppad), z),
            ],
            out_specs=pl.BlockSpec((1, c_tot, TQ), lambda n, i: (n, 0, i)),
            scratch_shapes=[
                pltpu.VMEM((2, Cin, Ppad), io_dtype),
                pltpu.SemaphoreType.DMA((2,)),
            ],
            compiler_params=pltpu.CompilerParams(
                dimension_semantics=("parallel", "arbitrary"),
                vmem_limit_bytes=vmem_limit),
            cost_estimate=cost,
        )(xp, w1f, b1f, w2f, b2f, cst)

    # Output is already channels-first and flat in H*W -> reshape + slice only.
    return y_flat.reshape(N, c_tot, H, W)[:, :out_channels]


# ---------------------------------------------------------------------------
# Pure-JAX reference (for correctness checks)
# ---------------------------------------------------------------------------
def ghost_conv2d_ref(x, params, out_channels, ratio=2):
    init_c = math.ceil(out_channels / ratio)

    y1 = lax.conv_general_dilated(
        x, params["w1"], (1, 1), "VALID",
        dimension_numbers=("NCHW", "OIHW", "NCHW"))
    s1 = params["bn1_gamma"] / jnp.sqrt(params["bn1_var"] + _BN_EPS)
    b1 = params["bn1_beta"] - params["bn1_mean"] * s1
    y1 = jnp.maximum(y1 * s1[None, :, None, None] + b1[None, :, None, None], 0.0)

    y2 = lax.conv_general_dilated(
        y1, params["w2"], (1, 1), [(1, 1), (1, 1)],
        dimension_numbers=("NCHW", "OIHW", "NCHW"),
        feature_group_count=init_c)
    s2 = params["bn2_gamma"] / jnp.sqrt(params["bn2_var"] + _BN_EPS)
    b2 = params["bn2_beta"] - params["bn2_mean"] * s2
    y2 = jnp.maximum(y2 * s2[None, :, None, None] + b2[None, :, None, None], 0.0)

    return jnp.concatenate([y1, y2], axis=1)[:, :out_channels]


# ---------------------------------------------------------------------------
# Main
# ---------------------------------------------------------------------------
if __name__ == "__main__":
    def make_params(key, cin, out_channels, ratio):
        init_c = math.ceil(out_channels / ratio)
        new_c = init_c * (ratio - 1)
        ks = jax.random.split(key, 10)
        return {
            "w1": jax.random.normal(ks[0], (init_c, cin, 1, 1), jnp.float32) * 0.5,
            "bn1_gamma": 1.0 + 0.1 * jax.random.normal(ks[1], (init_c,), jnp.float32),
            "bn1_beta": 0.1 * jax.random.normal(ks[2], (init_c,), jnp.float32),
            "bn1_mean": 0.1 * jax.random.normal(ks[3], (init_c,), jnp.float32),
            "bn1_var": 0.5 + jnp.abs(jax.random.normal(ks[4], (init_c,), jnp.float32)),
            "w2": jax.random.normal(ks[5], (new_c, 1, 3, 3), jnp.float32) * 0.5,
            "bn2_gamma": 1.0 + 0.1 * jax.random.normal(ks[6], (new_c,), jnp.float32),
            "bn2_beta": 0.1 * jax.random.normal(ks[7], (new_c,), jnp.float32),
            "bn2_mean": 0.1 * jax.random.normal(ks[8], (new_c,), jnp.float32),
            "bn2_var": 0.5 + jnp.abs(jax.random.normal(ks[9], (new_c,), jnp.float32)),
        }

    ghost_fn = jax.jit(ghost_conv2d,
                       static_argnames=("out_channels", "ratio", "max_lanes"))

    key = jax.random.PRNGKey(0)
    k1, k3, kp1, kp3 = jax.random.split(key, 4)

    # Test 1: default config, f32 I/O, whole-image tiles (auto-pipelined path).
    N, Cin, H, W = 2, 4, 16, 16
    out_channels, ratio = 8, 2
    params = make_params(kp1, Cin, out_channels, ratio)
    x = jax.random.normal(k1, (N, Cin, H, W), jnp.float32)
    y = jax.block_until_ready(ghost_fn(x, params, out_channels=out_channels,
                                       ratio=ratio))
    y_ref = ghost_conv2d_ref(x, params, out_channels, ratio)
    assert y.shape == (N, out_channels, H, W), y.shape
    assert jnp.allclose(y, y_ref, atol=1e-4, rtol=1e-4), (
        float(jnp.max(jnp.abs(y - y_ref))))

    # Test 2: same config, bf16 I/O, forced row tiling (manual halo-DMA path).
    x_bf = x.astype(jnp.bfloat16)
    x_q = x_bf.astype(jnp.float32)        # common quantized input for the reference
    y2_ = jax.block_until_ready(ghost_fn(x_bf, params, out_channels=out_channels,
                                         ratio=ratio, max_lanes=128))
    y2_ref = ghost_conv2d_ref(x_q, params, out_channels, ratio)
    assert y2_.dtype == jnp.bfloat16
    assert jnp.allclose(y2_.astype(jnp.float32), y2_ref, atol=3e-2, rtol=3e-2), (
        float(jnp.max(jnp.abs(y2_.astype(jnp.float32) - y2_ref))))

    # Test 3: larger channel count -> MXU 1x1 path, bf16 I/O.
    N3, Cin3, H3, W3, out3 = 1, 16, 8, 16, 24
    params3 = make_params(kp3, Cin3, out3, 2)
    x3 = jax.random.normal(k3, (N3, Cin3, H3, W3), jnp.float32).astype(jnp.bfloat16)
    y3 = jax.block_until_ready(ghost_fn(x3, params3, out_channels=out3, ratio=2))
    y3_ref = ghost_conv2d_ref(x3.astype(jnp.float32), params3, out3, 2)
    assert jnp.allclose(y3.astype(jnp.float32), y3_ref, atol=3e-2, rtol=3e-2), (
        float(jnp.max(jnp.abs(y3.astype(jnp.float32) - y3_ref))))

    print("KERNEL_OK")
</pallas_src>

<mosaic_0001>
module attributes {stable_mosaic.version = 11 : i64} {
  func.func @_ghost_kernel_whole(%arg0: i32, %arg1: memref<1x4x384xf32, #tpu.memory_space<vmem>>, %arg2: memref<4x4xf32, #tpu.memory_space<vmem>>, %arg3: memref<4x1xf32, #tpu.memory_space<vmem>>, %arg4: memref<4x9xf32, #tpu.memory_space<vmem>>, %arg5: memref<4x1xf32, #tpu.memory_space<vmem>>, %arg6: memref<4x384xf32, #tpu.memory_space<vmem>>, %arg7: memref<1x8x256xf32, #tpu.memory_space<vmem>>) attributes {dimension_semantics = [#tpu.dimension_semantics<parallel>], iteration_bounds = array<i64: 2>, scalar_prefetch = 0 : i64, scratch_operands = 0 : i64, tpu.core_type = #tpu.core_type<tc>, window_params = [{transform_indices = @transform_0, window_bounds = array<i64: 1, 4, 384>}, {pipeline_mode = #tpu.pipeline_mode<synchronous>, transform_indices = @transform_1, window_bounds = array<i64: 4, 4>}, {pipeline_mode = #tpu.pipeline_mode<synchronous>, transform_indices = @transform_2, window_bounds = array<i64: 4, 1>}, {pipeline_mode = #tpu.pipeline_mode<synchronous>, transform_indices = @transform_3, window_bounds = array<i64: 4, 9>}, {pipeline_mode = #tpu.pipeline_mode<synchronous>, transform_indices = @transform_4, window_bounds = array<i64: 4, 1>}, {pipeline_mode = #tpu.pipeline_mode<synchronous>, transform_indices = @transform_5, window_bounds = array<i64: 4, 384>}, {transform_indices = @transform_6, window_bounds = array<i64: 1, 8, 256>}]} {
    %c0 = arith.constant 0 : index
    %c0_0 = arith.constant 0 : index
    %c0_1 = arith.constant 0 : index
    %0 = vector.load %arg1[%c0, %c0_0, %c0_1] : memref<1x4x384xf32, #tpu.memory_space<vmem>>, vector<1x4x384xf32>
    %1 = vector.shape_cast %0 : vector<1x4x384xf32> to vector<4x384xf32>
    %c0_2 = arith.constant 0 : index
    %c0_3 = arith.constant 0 : index
    %2 = vector.load %arg6[%c0_2, %c0_3] : memref<4x384xf32, #tpu.memory_space<vmem>>, vector<1x384xf32>
    %c1 = arith.constant 1 : index
    %c0_4 = arith.constant 0 : index
    %3 = vector.load %arg6[%c1, %c0_4] : memref<4x384xf32, #tpu.memory_space<vmem>>, vector<1x384xf32>
    %c2 = arith.constant 2 : index
    %c0_5 = arith.constant 0 : index
    %4 = vector.load %arg6[%c2, %c0_5] : memref<4x384xf32, #tpu.memory_space<vmem>>, vector<1x384xf32>
    %c3 = arith.constant 3 : index
    %c0_6 = arith.constant 0 : index
    %5 = vector.load %arg6[%c3, %c0_6] : memref<4x384xf32, #tpu.memory_space<vmem>>, vector<1x384xf32>
    %cst = arith.constant 1.000000e+00 : f32
    %6 = vector.broadcast %cst : f32 to vector<1x384xf32>
    %7 = arith.mulf %6, %4 : vector<1x384xf32>
    %cst_7 = arith.constant 1.000000e+00 : f32
    %8 = vector.broadcast %cst_7 : f32 to vector<1x384xf32>
    %9 = arith.subf %8, %7 : vector<1x384xf32>
    %cst_8 = arith.constant 1.000000e+00 : f32
    %10 = vector.broadcast %cst_8 : f32 to vector<1x384xf32>
    %11 = arith.mulf %10, %5 : vector<1x384xf32>
    %12 = arith.subf %9, %11 : vector<1x384xf32>
    %c0_9 = arith.constant 0 : index
    %c0_10 = arith.constant 0 : index
    %13 = vector.load %arg2[%c0_9, %c0_10] : memref<4x4xf32, #tpu.memory_space<vmem>>, vector<4x1xf32>
    %14 = vector.extract_strided_slice %1 {offsets = [0, 0], sizes = [1, 384], strides = [1, 1]} : vector<4x384xf32> to vector<1x384xf32>
    %15 = vector.broadcast %13 : vector<4x1xf32> to vector<4x384xf32>
    %16 = vector.broadcast %14 : vector<1x384xf32> to vector<4x384xf32>
    %17 = arith.mulf %15, %16 : vector<4x384xf32>
    %c0_11 = arith.constant 0 : index
    %c1_12 = arith.constant 1 : index
    %18 = vector.load %arg2[%c0_11, %c1_12] : memref<4x4xf32, #tpu.memory_space<vmem>>, vector<4x1xf32>
    %19 = vector.extract_strided_slice %1 {offsets = [1, 0], sizes = [1, 384], strides = [1, 1]} : vector<4x384xf32> to vector<1x384xf32>
    %20 = vector.broadcast %18 : vector<4x1xf32> to vector<4x384xf32>
    %21 = vector.broadcast %19 : vector<1x384xf32> to vector<4x384xf32>
    %22 = arith.mulf %20, %21 : vector<4x384xf32>
    %23 = arith.addf %17, %22 : vector<4x384xf32>
    %c0_13 = arith.constant 0 : index
    %c2_14 = arith.constant 2 : index
    %24 = vector.load %arg2[%c0_13, %c2_14] : memref<4x4xf32, #tpu.memory_space<vmem>>, vector<4x1xf32>
    %25 = vector.extract_strided_slice %1 {offsets = [2, 0], sizes = [1, 384], strides = [1, 1]} : vector<4x384xf32> to vector<1x384xf32>
    %26 = vector.broadcast %24 : vector<4x1xf32> to vector<4x384xf32>
    %27 = vector.broadcast %25 : vector<1x384xf32> to vector<4x384xf32>
    %28 = arith.mulf %26, %27 : vector<4x384xf32>
    %29 = arith.addf %23, %28 : vector<4x384xf32>
    %c0_15 = arith.constant 0 : index
    %c3_16 = arith.constant 3 : index
    %30 = vector.load %arg2[%c0_15, %c3_16] : memref<4x4xf32, #tpu.memory_space<vmem>>, vector<4x1xf32>
    %31 = vector.extract_strided_slice %1 {offsets = [3, 0], sizes = [1, 384], strides = [1, 1]} : vector<4x384xf32> to vector<1x384xf32>
    %32 = vector.broadcast %30 : vector<4x1xf32> to vector<4x384xf32>
    %33 = vector.broadcast %31 : vector<1x384xf32> to vector<4x384xf32>
    %34 = arith.mulf %32, %33 : vector<4x384xf32>
    %35 = arith.addf %29, %34 : vector<4x384xf32>
    %c0_17 = arith.constant 0 : index
    %c0_18 = arith.constant 0 : index
    %36 = vector.load %arg3[%c0_17, %c0_18] : memref<4x1xf32, #tpu.memory_space<vmem>>, vector<4x1xf32>
    %37 = vector.broadcast %36 : vector<4x1xf32> to vector<4x384xf32>
    %38 = arith.addf %35, %37 : vector<4x384xf32>
    %cst_19 = arith.constant 0.000000e+00 : f32
    %39 = vector.broadcast %cst_19 : f32 to vector<4x384xf32>
    %40 = arith.maximumf %38, %39 : vector<4x384xf32>
    %41 = vector.broadcast %12 : vector<1x384xf32> to vector<4x384xf32>
    %42 = arith.mulf %40, %41 : vector<4x384xf32>
    %c368_i32 = arith.constant 368 : i32
    %43 = tpu.dynamic_rotate %42 by %c368_i32 dim 1 : vector<4x384xf32>, i32 -> vector<4x384xf32>
    %c352_i32 = arith.constant 352 : i32
    %44 = tpu.dynamic_rotate %42 by %c352_i32 dim 1 : vector<4x384xf32>, i32 -> vector<4x384xf32>
    %c0_20 = arith.constant 0 : index
    %c0_21 = arith.constant 0 : index
    %45 = vector.load %arg4[%c0_20, %c0_21] : memref<4x9xf32, #tpu.memory_space<vmem>>, vector<4x1xf32>
    %46 = vector.broadcast %45 : vector<4x1xf32> to vector<4x384xf32>
    %47 = arith.mulf %42, %46 : vector<4x384xf32>
    %c0_22 = arith.constant 0 : index
    %c3_23 = arith.constant 3 : index
    %48 = vector.load %arg4[%c0_22, %c3_23] : memref<4x9xf32, #tpu.memory_space<vmem>>, vector<4x1xf32>
    %49 = vector.broadcast %48 : vector<4x1xf32> to vector<4x384xf32>
    %50 = arith.mulf %43, %49 : vector<4x384xf32>
    %51 = arith.addf %47, %50 : vector<4x384xf32>
    %c0_24 = arith.constant 0 : index
    %c6 = arith.constant 6 : index
    %52 = vector.load %arg4[%c0_24, %c6] : memref<4x9xf32, #tpu.memory_space<vmem>>, vector<4x1xf32>
    %53 = vector.broadcast %52 : vector<4x1xf32> to vector<4x384xf32>
    %54 = arith.mulf %44, %53 : vector<4x384xf32>
    %55 = arith.addf %51, %54 : vector<4x384xf32>
    %c0_25 = arith.constant 0 : index
    %c1_26 = arith.constant 1 : index
    %56 = vector.load %arg4[%c0_25, %c1_26] : memref<4x9xf32, #tpu.memory_space<vmem>>, vector<4x1xf32>
    %57 = vector.broadcast %56 : vector<4x1xf32> to vector<4x384xf32>
    %58 = arith.mulf %42, %57 : vector<4x384xf32>
    %c0_27 = arith.constant 0 : index
    %c4 = arith.constant 4 : index
    %59 = vector.load %arg4[%c0_27, %c4] : memref<4x9xf32, #tpu.memory_space<vmem>>, vector<4x1xf32>
    %60 = vector.broadcast %59 : vector<4x1xf32> to vector<4x384xf32>
    %61 = arith.mulf %43, %60 : vector<4x384xf32>
    %62 = arith.addf %58, %61 : vector<4x384xf32>
    %c0_28 = arith.constant 0 : index
    %c7 = arith.constant 7 : index
    %63 = vector.load %arg4[%c0_28, %c7] : memref<4x9xf32, #tpu.memory_space<vmem>>, vector<4x1xf32>
    %64 = vector.broadcast %63 : vector<4x1xf32> to vector<4x384xf32>
    %65 = arith.mulf %44, %64 : vector<4x384xf32>
    %66 = arith.addf %62, %65 : vector<4x384xf32>
    %c0_29 = arith.constant 0 : index
    %c2_30 = arith.constant 2 : index
    %67 = vector.load %arg4[%c0_29, %c2_30] : memref<4x9xf32, #tpu.memory_space<vmem>>, vector<4x1xf32>
    %68 = vector.broadcast %67 : vector<4x1xf32> to vector<4x384xf32>
    %69 = arith.mulf %42, %68 : vector<4x384xf32>
    %c0_31 = arith.constant 0 : index
    %c5 = arith.constant 5 : index
    %70 = vector.load %arg4[%c0_31, %c5] : memref<4x9xf32, #tpu.memory_space<vmem>>, vector<4x1xf32>
    %71 = vector.broadcast %70 : vector<4x1xf32> to vector<4x384xf32>
    %72 = arith.mulf %43, %71 : vector<4x384xf32>
    %73 = arith.addf %69, %72 : vector<4x384xf32>
    %c0_32 = arith.constant 0 : index
    %c8 = arith.constant 8 : index
    %74 = vector.load %arg4[%c0_32, %c8] : memref<4x9xf32, #tpu.memory_space<vmem>>, vector<4x1xf32>
    %75 = vector.broadcast %74 : vector<4x1xf32> to vector<4x384xf32>
    %76 = arith.mulf %44, %75 : vector<4x384xf32>
    %77 = arith.addf %73, %76 : vector<4x384xf32>
    %c1_i32 = arith.constant 1 : i32
    %78 = tpu.dynamic_rotate %55 by %c1_i32 dim 1 : vector<4x384xf32>, i32 -> vector<4x384xf32>
    %79 = vector.broadcast %2 : vector<1x384xf32> to vector<4x384xf32>
    %80 = arith.mulf %79, %78 : vector<4x384xf32>
    %81 = arith.addf %66, %80 : vector<4x384xf32>
    %c383_i32 = arith.constant 383 : i32
    %82 = tpu.dynamic_rotate %77 by %c383_i32 dim 1 : vector<4x384xf32>, i32 -> vector<4x384xf32>
    %83 = vector.broadcast %3 : vector<1x384xf32> to vector<4x384xf32>
    %84 = arith.mulf %83, %82 : vector<4x384xf32>
    %85 = arith.addf %81, %84 : vector<4x384xf32>
    %c0_33 = arith.constant 0 : index
    %c0_34 = arith.constant 0 : index
    %86 = vector.load %arg5[%c0_33, %c0_34] : memref<4x1xf32, #tpu.memory_space<vmem>>, vector<4x1xf32>
    %87 = vector.broadcast %86 : vector<4x1xf32> to vector<4x384xf32>
    %88 = arith.addf %85, %87 : vector<4x384xf32>
    %cst_35 = arith.constant 0.000000e+00 : f32
    %89 = vector.broadcast %cst_35 : f32 to vector<4x384xf32>
    %90 = arith.maximumf %88, %89 : vector<4x384xf32>
    %91 = vector.extract_strided_slice %43 {offsets = [0, 0], sizes = [4, 256], strides = [1, 1]} : vector<4x384xf32> to vector<4x256xf32>
    %92 = vector.shape_cast %91 : vector<4x256xf32> to vector<1x4x256xf32>
    %c0_36 = arith.constant 0 : index
    %c0_37 = arith.constant 0 : index
    %c0_38 = arith.constant 0 : index
    %93 = vector.load %arg7[%c0_36, %c0_37, %c0_38] : memref<1x8x256xf32, #tpu.memory_space<vmem>>, vector<1x4x256xf32>
    tpu.vector_store %arg7[%c0_36, %c0_37, %c0_38], %92 {strides = array<i32>} : memref<1x8x256xf32, #tpu.memory_space<vmem>>, vector<1x4x256xf32>,
    %94 = vector.extract_strided_slice %90 {offsets = [0, 0], sizes = [4, 256], strides = [1, 1]} : vector<4x384xf32> to vector<4x256xf32>
    %95 = vector.shape_cast %94 : vector<4x256xf32> to vector<1x4x256xf32>
    %c0_39 = arith.constant 0 : index
    %c4_40 = arith.constant 4 : index
    %c0_41 = arith.constant 0 : index
    %96 = vector.load %arg7[%c0_39, %c4_40, %c0_41] : memref<1x8x256xf32, #tpu.memory_space<vmem>>, vector<1x4x256xf32>
    tpu.vector_store %arg7[%c0_39, %c4_40, %c0_41], %95 {strides = array<i32>} : memref<1x8x256xf32, #tpu.memory_space<vmem>>, vector<1x4x256xf32>,
    return
  }
  func.func @transform_0(%arg0: i32) -> (i32, i32, i32) {
    %c0_i32 = arith.constant 0 : i32
    %c0_i32_0 = arith.constant 0 : i32
    %c0_i32_1 = arith.constant 0 : i32
    return %arg0, %c0_i32, %c0_i32_0 : i32, i32, i32
  }
  func.func @transform_1(%arg0: i32) -> (i32, i32) {
    %c0_i32 = arith.constant 0 : i32
    %c0_i32_0 = arith.constant 0 : i32
    %c0_i32_1 = arith.constant 0 : i32
    return %c0_i32, %c0_i32_0 : i32, i32
  }
  func.func @transform_2(%arg0: i32) -> (i32, i32) {
    %c0_i32 = arith.constant 0 : i32
    %c0_i32_0 = arith.constant 0 : i32
    %c0_i32_1 = arith.constant 0 : i32
    return %c0_i32, %c0_i32_0 : i32, i32
  }
  func.func @transform_3(%arg0: i32) -> (i32, i32) {
    %c0_i32 = arith.constant 0 : i32
    %c0_i32_0 = arith.constant 0 : i32
    %c0_i32_1 = arith.constant 0 : i32
    return %c0_i32, %c0_i32_0 : i32, i32
  }
  func.func @transform_4(%arg0: i32) -> (i32, i32) {
    %c0_i32 = arith.constant 0 : i32
    %c0_i32_0 = arith.constant 0 : i32
    %c0_i32_1 = arith.constant 0 : i32
    return %c0_i32, %c0_i32_0 : i32, i32
  }
  func.func @transform_5(%arg0: i32) -> (i32, i32) {
    %c0_i32 = arith.constant 0 : i32
    %c0_i32_0 = arith.constant 0 : i32
    %c0_i32_1 = arith.constant 0 : i32
    return %c0_i32, %c0_i32_0 : i32, i32
  }
  func.func @transform_6(%arg0: i32) -> (i32, i32, i32) {
    %c0_i32 = arith.constant 0 : i32
    %c0_i32_0 = arith.constant 0 : i32
    %c0_i32_1 = arith.constant 0 : i32
    return %arg0, %c0_i32, %c0_i32_0 : i32, i32, i32
  }
}

</mosaic_0001>

<bundles_post_ra>
// kernel: ghost_conv2d.1
= control target key start
LH: loop header
LB: loop body
LE: loop exit
PB: predicated region body
PF: predicated region fallthrough
CT: control target
= control target key end

     0   :  { %s774_s21 = smov 0   ;;  %s901_s0 = inlined_call_operand.vmem [shape: f32[2,4,384], index: 0, kind: input, shape index: {}]   ;;  %s902_s1 = inlined_call_operand.vmem [shape: f32[4,4], index: 1, kind: input, shape index: {}]   ;;  %s903_s2 = inlined_call_operand.vmem [shape: f32[4,1], index: 2, kind: input, shape index: {}]   ;;  %s904_s3 = inlined_call_operand.vmem [shape: f32[4,9], index: 3, kind: input, shape index: {}]   ;;  %s905_s4 = inlined_call_operand.vmem [shape: f32[4,1], index: 4, kind: input, shape index: {}]   ;;  %s906_s5 = inlined_call_operand.vmem [shape: f32[4,384], index: 5, kind: input, shape index: {}]   ;;  %s907_s6 = inlined_call_operand.vmem [shape: f32[2,8,256], index: 6, kind: output, shape index: {}]  }
   0x1 LB: > { %s666_s22 = sadd.s32 4294967295, %s724_s21   ;;  %p670_p0 = scmp.ge.s32.totalorder %s724_s21, 1  ;;  %s724_s21 = sphi %s774_s21, %s16_s21  }
   0x2   : > { %p212_p1 = scmp.lt.s32.totalorder %s724_s21, 3 }
   0x4   : > { %p213_p2 = pnand %p670_p0, %p212_p1 }
   0x5   : > { %v263_v0 = vld [vmem:[%s902_s1] sm:$0xf] (!%p213_p2)  ;;  %v726_v1 = vmov (!%p213_p2), 0   ;;  %v727_v2 = vmov (!%p213_p2), 2   ;;  %v728_v3 = vmov (!%p213_p2), 1   ;;  %v729_v4 = vmov (!%p213_p2), 3  }
   0x6   : > { %216 = sbr.rel (%p213_p2) target bundleno = 421 (0x1a5), region = 44  ;;  %702 = vset.pattern.permute.xlu0 (!%p213_p2), %v726_v1  ;;  %704 = vset.pattern.permute.xlu1 (!%p213_p2), %v727_v2  ;;  %v412_v5 = vld [vmem:[%s903_s2] sm:$0xf] (!%p213_p2)  ;;  %v730_v7 = vmov (!%p213_p2), 6   ;;  %v731_v8 = vmov (!%p213_p2), 5   ;;  %v732_v9 = vmov (!%p213_p2), 8   ;;  %v271_v11 = vlaneseq (!%p213_p2) }
   0x7   : > { %266 = vperm.xlu0 (!%p213_p2), %702, %v263_v0   ;;  %339 = vperm.xlu1 (!%p213_p2), %704, %v263_v0   ;;  %v792_v6 = vld [vmem:[%s904_s3] sm:$0xf] (!%p213_p2)  ;;  %v733_v10 = vmov (!%p213_p2), 4   ;;  %p242_p3 = scmp.lt.s32.totalorder (!%p213_p2), %s666_s22, 1  ;;  %s734_s13 = smov (!%p213_p2), 112  }
   0x8   : > { %v272_v12 = vshrl.u32 (!%p213_p2), %v271_v11, 7  ;;  %v675_v44 = vld [vmem:[%s906_s5 + $0x2] ss:$4 sm:$0x7] (!%p213_p2)  ;;  %s735_s14 = smov (!%p213_p2), 96   ;;  %s738_s23 = smov (!%p213_p2), 127  }
   0x9   : > { %v261_v55 = vsub.f32 (!%p213_p2), 1.0, %v675_v44 }
   0xa   : > { %v813_v13 = vsub.s32 (!%p213_p2), 0, %v272_v12  ;;  %v277_v14 = vsub.s32 (!%p213_p2), 4, %v272_v12  ;;  %v815_v17 = vsub.s32 (!%p213_p2), 2, %v272_v12  ;;  %v817_v18 = vsub.s32 (!%p213_p2), 1, %v272_v12 }
   0xb   : > { %703 = vset.pattern.permute.xlu0 (!%p213_p2), %v728_v3  ;;  %705 = vset.pattern.permute.xlu1 (!%p213_p2), %v729_v4  ;;  %v311_v19 = vsub.s32 (!%p213_p2), 5, %v272_v12  ;;  %v348_v20 = vsub.s32 (!%p213_p2), 6, %v272_v12  ;;  %v381_v21 = vsub.s32 (!%p213_p2), 3, %v272_v12  ;;  %v385_v22 = vsub.s32 (!%p213_p2), 7, %v272_v12 }
   0xc   : > { %302 = vperm.xlu0 (!%p213_p2), %703, %v263_v0   ;;  %376 = vperm.xlu1 (!%p213_p2), %705, %v263_v0   ;;  %v676_v0 = vld [vmem:[%s906_s5 + $0x3] ss:$4 sm:$0x7] (!%p213_p2) }
   0xd   : > { %s909_s22 = smov (!%p242_p3, %s666_s22), 1 }
   0xe   : > { %s680_s29 = smul.u32 12, %s909_s22  ;;  %s679_s17 = sshll.u32 %s909_s22, 4 }
   0xf   : > { %s871_s20 = scalar_lea.vmem %s907_s6, %s679_s17  ;;  %s737_s22 = smov 1  }
  0x10   : > { %706 = vset.pattern.permute.xlu1 %v726_v1  ;;  %707 = vset.pattern.permute.xlu0 %v726_v1  ;;  %s246_s8 = scalar_lea.vmem %s901_s0, %s680_s29 }
  0x11   : > { %415 = vperm.xlu1 %706, %v412_v5   ;;  %468 = vperm.xlu0 %707, %v792_v6   ;;  %v252_v15 = vld [vmem:[%s246_s8] sm:$0xff]  ;;  %v253_v16 = vld [vmem:[%s246_s8 + $0x8] sm:$0xf] }
  0x12   : > { %v274_v23 = vrot.slane %v252_v15, %v813_v13  ;;  %v278_v24 = vrot.slane %v252_v15, %v277_v14  ;;  %v282_v25 = vrot.slane %v253_v16, %v813_v13  ;;  %v345_v26 = vrot.slane %v252_v15, %v815_v17 }
  0x13   : > { %v308_v27 = vrot.slane %v252_v15, %v817_v18  ;;  %v312_v28 = vrot.slane %v252_v15, %v311_v19  ;;  %v316_v29 = vrot.slane %v253_v16, %v817_v18  ;;  %v349_v30 = vrot.slane %v252_v15, %v348_v20 }
  0x14   : > { %v353_v31 = vrot.slane %v253_v16, %v815_v17  ;;  %v382_v32 = vrot.slane %v252_v15, %v381_v21  ;;  %v386_v33 = vrot.slane %v252_v15, %v385_v22  ;;  %v390_v36 = vrot.slane %v253_v16, %v381_v21 }
  0x15   : > { %710 = vset.pattern.permute.xlu0 %v727_v2  ;;  %708 = vset.pattern.permute.xlu1 %v729_v4  ;;  %v289_v37 = vrot.slane %v274_v23, %v813_v13  ;;  %v293_v38 = vrot.slane %v278_v24, %v813_v13  ;;  %v297_v39 = vrot.slane %v282_v25, %v813_v13 }
  0x16   : > { %517 = vperm.xlu0 %710, %v792_v6   ;;  %475 = vperm.xlu1 %708, %v792_v6   ;;  %v360_v40 = vrot.slane %v345_v26, %v815_v17  ;;  %v323_v41 = vrot.slane %v308_v27, %v817_v18  ;;  %v327_v42 = vrot.slane %v312_v28, %v817_v18 }
  0x17   : > { %v331_v43 = vrot.slane %v316_v29, %v817_v18  ;;  %v364_v45 = vrot.slane %v349_v30, %v815_v17  ;;  %v368_v46 = vrot.slane %v353_v31, %v815_v17  ;;  %v397_v47 = vrot.slane %v382_v32, %v381_v21  ;;  %v591_v31 = vld [vmem:[%s905_s4] sm:$0xf] }
  0x18   : > { %v401_v48 = vrot.slane %v386_v33, %v381_v21  ;;  %v405_v49 = vrot.slane %v390_v36, %v381_v21 }
  0x1a   : > { %709 = vset.pattern.permute.xlu1 %v730_v7  ;;  %713 = vset.pattern.permute.xlu0 %v728_v3  ;;  %v262_v7 = vsub.f32 %v261_v55, %v676_v0 }
  0x1b   : > { %485 = vperm.xlu1 %709, %v792_v6  }
  0x1c   : > { %v428_v21 = vrot.slane %v262_v7, %v813_v13  ;;  %v432_v22 = vrot.slane %v262_v7, %v817_v18  ;;  %v436_v29 = vrot.slane %v262_v7, %v815_v17  ;;  %v736_v17 = vmov 7  }
  0x1f   : > { %711 = vset.pattern.permute.xlu1 %v731_v8 }
  0x20   : > { %524 = vperm.xlu1 %711, %v792_v6  }
  0x24   : > { %712 = vset.pattern.permute.xlu1 %v732_v9 }
  0x25   : > { %534 = vperm.xlu1 %712, %v792_v6  }
  0x29   : > { %714 = vset.pattern.permute.xlu1 %v733_v10 }
  0x86   : > { %v267_v34 = vpop.permute.xlu0 %266  ;;  %v340_v35 = vpop.permute.xlu1 %339 }
  0x87   : > { %v298_v50 = vmul.f32 %v289_v37, %v267_v34  ;;  %v299_v51 = vmul.f32 %v293_v38, %v267_v34  ;;  %v300_v52 = vmul.f32 %v297_v39, %v267_v34  ;;  %v369_v56 = vmul.f32 %v360_v40, %v340_v35 }
  0x88   : > { %v370_v60 = vmul.f32 %v364_v45, %v340_v35  ;;  %v371_v61 = vmul.f32 %v368_v46, %v340_v35  ;;  %v864_v37 = vand.u32 127, %v271_v11 }
  0x8a   : > { %vm451_vm0 = vcmp.lt.s32.totalorder %v864_v37, 112  ;;  %vm461_vm1 = vcmp.lt.s32.totalorder %v864_v37, 96  ;;  %vm549_vm2 = vcmp.lt.s32.totalorder %v864_v37, 1  ;;  %vm573_vm3 = vcmp.lt.s32.totalorder %v864_v37, 127 }
  0x8b   : > { %v303_v53 = vpop.permute.xlu0 %302  ;;  %v377_v54 = vpop.permute.xlu1 %376 }
  0x8c   : > { %v332_v57 = vmul.f32 %v323_v41, %v303_v53  ;;  %v333_v58 = vmul.f32 %v327_v42, %v303_v53  ;;  %v334_v59 = vmul.f32 %v331_v43, %v303_v53  ;;  %v406_v62 = vmul.f32 %v397_v47, %v377_v54 }
  0x8d   : > { %v407_v63 = vmul.f32 %v401_v48, %v377_v54  ;;  %v408_v5 = vmul.f32 %v405_v49, %v377_v54 }
  0x8e   : > { %v335_v2 = vadd.f32 %v332_v57, %v298_v50  ;;  %v336_v3 = vadd.f32 %v333_v58, %v299_v51  ;;  %v337_v4 = vadd.f32 %v334_v59, %v300_v52 }
  0x90   : > { %v372_v8 = vadd.f32 %v369_v56, %v335_v2  ;;  %v373_v9 = vadd.f32 %v370_v60, %v336_v3  ;;  %v374_v10 = vadd.f32 %v371_v61, %v337_v4  ;;  %v416_v12 = vpop.permute.xlu1 %415  ;;  %v469_v35 = vpop.permute.xlu0 %468 }
  0x92   : > { %v409_v14 = vadd.f32 %v406_v62, %v372_v8  ;;  %v410_v15 = vadd.f32 %v407_v63, %v373_v9  ;;  %v411_v16 = vadd.f32 %v408_v5, %v374_v10 }
  0x94   : > { %v418_v19 = vadd.f32 %v416_v12, %v409_v14  ;;  %v419_v20 = vadd.f32 %v416_v12, %v410_v15  ;;  %v420_v23 = vadd.f32 %v416_v12, %v411_v16 }
  0x95   : > { %v476_v32 = vpop.permute.xlu1 %475  ;;  %v518_v38 = vpop.permute.xlu0 %517 }
  0x96   : > { %v421_v24 = vmax.f32 %v418_v19, 0.0  ;;  %v422_v25 = vmax.f32 %v419_v20, 0.0  ;;  %v423_v28 = vmax.f32 %v420_v23, 0.0 }
  0x98   : > { %v842_v26 = vmul.f32 %v428_v21, %v421_v24  ;;  %v844_v27 = vmul.f32 %v432_v22, %v422_v25  ;;  %v849_v30 = vmul.f32 %v436_v29, %v423_v28 }
  0x9a   : > { %445 = vrot.lane.b32.xlu1 %v844_v27, %s734_s13  ;;  %443 = vrot.lane.b32.xlu0 %v842_v26, %s734_s13  ;;  %v486_v33 = vpop.permute.xlu1 %485  ;;  %v471_v43 = vmul.f32 %v469_v35, %v842_v26  ;;  %v472_v47 = vmul.f32 %v469_v35, %v844_v27  ;;  %v473_v58 = vmul.f32 %v469_v35, %v849_v30 }
  0x9b   : > { %v521_v59 = vmul.f32 %v518_v38, %v844_v27  ;;  %v520_v4 = vmul.f32 %v518_v38, %v842_v26  ;;  %v522_v12 = vmul.f32 %v518_v38, %v849_v30 }
  0x9e   : > { %455 = vrot.lane.b32.xlu1 %v842_v26, %s735_s14  ;;  %447 = vrot.lane.b32.xlu0 %v849_v30, %s734_s13 }
  0x9f   : > { %v525_v34 = vpop.permute.xlu1 %524 }
  0xa2   : > { %459 = vrot.lane.b32.xlu1 %v849_v30, %s735_s14  ;;  %457 = vrot.lane.b32.xlu0 %v844_v27, %s735_s14 }
  0xa4   : > { %v535_v36 = vpop.permute.xlu1 %534 }
  0xa6   : > { %501 = vperm.xlu1 %714, %v792_v6   ;;  %495 = vperm.xlu0 %713, %v792_v6  }
  0xaa   : > { %715 = vset.pattern.permute.xlu1 %v736_v17  ;;  %717 = vset.pattern.permute.xlu0 %v726_v1 }
  0xab   : > { %509 = vperm.xlu1 %715, %v792_v6  }
  0xaf   : > { %716 = vset.pattern.permute.xlu1 %v726_v1 }
  0xb0   : > { %594 = vperm.xlu1 %716, %v591_v31  }
 0x10c   : > { %v446_v6 = vpop.permute.xlu1 %445  ;;  %v444_v1 = vpop.permute.xlu0 %443 }
 0x10d   : > { %v453_v39 = vsel %vm451_vm0, %v444_v1, %v446_v6 }
 0x10e   : > { %601 = vst [vmem:[%s871_s20] sm:$0xf] %v453_v39  ;;  %v478_v41 = vmul.f32 %v476_v32, %v453_v39  ;;  %v527_v0 = vmul.f32 %v525_v34, %v453_v39 }
 0x110   : > { %v456_v40 = vpop.permute.xlu1 %455  ;;  %v448_v42 = vpop.permute.xlu0 %447  ;;  %v481_v49 = vadd.f32 %v478_v41, %v471_v43  ;;  %v530_v10 = vadd.f32 %v527_v0, %v520_v4 }
 0x111   : > { %v452_v11 = vsel %vm451_vm0, %v446_v6, %v448_v42  ;;  %v454_v44 = vsel %vm451_vm0, %v448_v42, %v444_v1 }
 0x112   : > { %v479_v45 = vmul.f32 %v476_v32, %v452_v11  ;;  %602 = vst [vmem:[%s871_s20 + $0x8] sm:$0xf] %v452_v11  ;;  %v480_v50 = vmul.f32 %v476_v32, %v454_v44  ;;  %v528_v54 = vmul.f32 %v525_v34, %v452_v11  ;;  %v529_v9 = vmul.f32 %v525_v34, %v454_v44 }
 0x114   : > { %v460_v46 = vpop.permute.xlu1 %459  ;;  %v458_v48 = vpop.permute.xlu0 %457  ;;  %v482_v57 = vadd.f32 %v479_v45, %v472_v47  ;;  %v483_v2 = vadd.f32 %v480_v50, %v473_v58  ;;  %v531_v3 = vadd.f32 %v528_v54, %v521_v59  ;;  %v532_v16 = vadd.f32 %v529_v9, %v522_v12 }
 0x115   : > { %v464_v51 = vsel %vm461_vm1, %v460_v46, %v456_v40  ;;  %v462_v52 = vsel %vm461_vm1, %v458_v48, %v460_v46  ;;  %v463_v53 = vsel %vm461_vm1, %v456_v40, %v458_v48 }
 0x116   : > { %v488_v55 = vmul.f32 %v486_v33, %v463_v53  ;;  %v489_v56 = vmul.f32 %v486_v33, %v462_v52  ;;  %v490_v60 = vmul.f32 %v486_v33, %v464_v51  ;;  %v538_v61 = vmul.f32 %v535_v36, %v462_v52 }
 0x117   : > { %v537_v5 = vmul.f32 %v535_v36, %v463_v53  ;;  %v539_v14 = vmul.f32 %v535_v36, %v464_v51  ;;  %v254_v36 = vld [vmem:[%s906_s5] ss:$4 sm:$0x7] }
 0x118   : > { %v492_v62 = vadd.f32 %v489_v56, %v482_v57  ;;  %v491_v63 = vadd.f32 %v488_v55, %v481_v49  ;;  %v541_v7 = vadd.f32 %v538_v61, %v531_v3  ;;  %v493_v8 = vadd.f32 %v490_v60, %v483_v2 }
 0x119   : > { %v540_v15 = vadd.f32 %v537_v5, %v530_v10  ;;  %v542_v20 = vadd.f32 %v539_v14, %v532_v16  ;;  %v556_v6 = vrot.slane %v254_v36, %v813_v13 }
 0x11a   : > { %545 = vrot.lane.b32.xlu1 %v492_v62, %s737_s22  ;;  %543 = vrot.lane.b32.xlu0 %v491_v63, %s737_s22 }
 0x11e   : > { %569 = vrot.lane.b32.xlu1 %v541_v7, %s738_s23  ;;  %547 = vrot.lane.b32.xlu0 %v493_v8, %s737_s22 }
 0x122   : > { %567 = vrot.lane.b32.xlu0 %v540_v15, %s738_s23 }
 0x125   : > { %v502_v19 = vpop.permute.xlu1 %501  ;;  %v496_v21 = vpop.permute.xlu0 %495 }
 0x126   : > { %v504_v22 = vmul.f32 %v502_v19, %v453_v39  ;;  %v505_v23 = vmul.f32 %v502_v19, %v452_v11  ;;  %v498_v24 = vmul.f32 %v496_v21, %v842_v26  ;;  %v499_v25 = vmul.f32 %v496_v21, %v844_v27  ;;  %571 = vrot.lane.b32.xlu0 %v542_v20, %s738_s23  ;;  %v674_v26 = vld [vmem:[%s906_s5 + $0x1] ss:$4 sm:$0x7] }
 0x127   : > { %v560_v39 = vrot.slane %v254_v36, %v817_v18  ;;  %v580_v41 = vrot.slane %v674_v26, %v813_v13  ;;  %v584_v48 = vrot.slane %v674_v26, %v817_v18 }
 0x128   : > { %v506_v29 = vadd.f32 %v504_v22, %v498_v24  ;;  %v507_v17 = vadd.f32 %v505_v23, %v499_v25 }
 0x12a   : > { %v510_v28 = vpop.permute.xlu1 %509 }
 0x12b   : > { %v512_v31 = vmul.f32 %v510_v28, %v463_v53  ;;  %v513_v32 = vmul.f32 %v510_v28, %v462_v52 }
 0x12d   : > { %v514_v30 = vadd.f32 %v512_v31, %v506_v29  ;;  %v515_v33 = vadd.f32 %v513_v32, %v507_v17 }
 0x12f   : > { %v595_v34 = vpop.permute.xlu1 %594 }
 0x18c   : > { %v544_v35 = vpop.permute.xlu0 %543  ;;  %v546_v38 = vpop.permute.xlu1 %545 }
 0x18d   : > { %v550_v42 = vsel %vm549_vm2, %v544_v35, %v546_v38 }
 0x18e   : > { %v564_v45 = vmul.f32 %v560_v39, %v550_v42 }
 0x190   : > { %v548_v27 = vpop.permute.xlu0 %547  ;;  %v570_v11 = vpop.permute.xlu1 %569  ;;  %v566_v52 = vadd.f32 %v564_v45, %v515_v33 }
 0x191   : > { %v551_v1 = vsel %vm549_vm2, %v548_v27, %v544_v35 }
 0x192   : > { %v563_v40 = vmul.f32 %v556_v6, %v551_v1 }
 0x194   : > { %v568_v43 = vpop.permute.xlu0 %567  ;;  %v565_v46 = vadd.f32 %v563_v40, %v514_v30 }
 0x195   : > { %v575_v44 = vsel %vm573_vm3, %v568_v43, %v570_v11 }
 0x196   : > { %v587_v47 = vmul.f32 %v580_v41, %v575_v44 }
 0x198   : > { %v589_v49 = vadd.f32 %v587_v47, %v565_v46  ;;  %v572_v50 = vpop.permute.xlu0 %571 }
 0x199   : > { %v574_v51 = vsel %vm573_vm3, %v570_v11, %v572_v50 }
 0x19a   : > { %v597_v53 = vadd.f32 %v595_v34, %v589_v49  ;;  %v588_v54 = vmul.f32 %v584_v48, %v574_v51 }
 0x19c   : > { %v599_v37 = vmax.f32 %v597_v53, 0.0  ;;  %v590_v55 = vadd.f32 %v588_v54, %v566_v52 }
 0x19e   : > { %v605_v13 = vrot.slane %v599_v37, 4  ;;  %v598_v56 = vadd.f32 %v595_v34, %v590_v55 }
 0x1a0   : > { %609 = vst [vmem:[%s871_s20] sm:$0xf0] %v605_v13  ;;  %v600_v57 = vmax.f32 %v598_v56, 0.0 }
 0x1a2   : > { %v606_v58 = vrot.slane %v600_v57, 4 }
 0x1a4   : > { %610 = vst [vmem:[%s871_s20 + $0x8] sm:$0xf0] %v606_v58 }
 0x1a5 PF: > { %s16_s21 = sadd.s32 1, %s724_s21  }
 0x1a6   : > { %p13_p4 = scmp.ge.s32.totalorder %s16_s21, 4  }
 0x1a8   :  { %15 = sbr.rel (!%p13_p4) target bundleno = 1 (0x1), region = 77 }

</bundles_post_ra>
